<compile_context>
chip_gen: v5e
topology: v5e:2x2
jax: 0.10.0
libtpu: 0.0.40
codegen_flags: <defaults>
</compile_context>

<pallas_src>
import math

import jax
import jax.numpy as jnp
from jax.experimental import pallas as pl
from jax.experimental.pallas import tpu as pltpu

LANES = 128  # TPU vreg lane width


def mapping_kernel(ids_ref, table_ref, out_ref):
    """out[r, l] = table[ids[r, l]].

    ids_ref:   (TILE_ROWS, 128) int32  lane-dense token tile
    table_ref: (1, V_pad)       int32  VMEM-resident table, V_pad % 128 == 0
    out_ref:   (TILE_ROWS, 128) int32
    """
    ids = ids_ref[...]
    tr, lanes = ids.shape
    table_row = table_ref[...]                      # (1, V_pad)
    n_chunks = table_row.shape[-1] // lanes

    # lane index inside a 128-wide vocab chunk (lanes is a power of two).
    # TODO(synk): out-of-range ids wrap modulo the padded vocab instead of
    # raising like PyTorch indexing would.
    lane_idx = ids & (lanes - 1)

    # Chunk 0: within-vreg lane gather against the broadcast table row.
    chunk0 = jnp.broadcast_to(table_row[:, 0:lanes], (tr, lanes))
    result = jnp.take_along_axis(chunk0, lane_idx, axis=1,
                                 mode="promise_in_bounds")

    if n_chunks > 1:
        chunk_idx = ids >> (lanes.bit_length() - 1)  # id // 128
        # Static unroll over 128-wide vocab chunks (n_chunks is trace-time).
        for c in range(1, n_chunks):
            chunk = jnp.broadcast_to(
                table_row[:, c * lanes:(c + 1) * lanes], (tr, lanes))
            g = jnp.take_along_axis(chunk, lane_idx, axis=1,
                                    mode="promise_in_bounds")
            result = jnp.where(chunk_idx == c, g, result)

    out_ref[...] = result


def mapping_forward(input_ids, mapping_table, *, tile_rows=512):
    """input_ids: int array (any shape); mapping_table: (V,) int -> same-shape int32."""
    orig_shape = input_ids.shape
    n_tokens = math.prod(orig_shape) if orig_shape else 1
    vocab = mapping_table.shape[0]

    # Pad the vocab axis to a multiple of 128 lanes; keep it as one lane-dense
    # (1, V_pad) row so it lives in VMEM once for the whole grid.
    v_pad = (-vocab) % LANES
    table2d = jnp.pad(mapping_table.astype(jnp.int32), (0, v_pad)).reshape(1, -1)

    # Flatten tokens into a lane-dense (rows, 128) slab (pad with id 0, a
    # valid index; padded rows are sliced away below).
    rows_needed = -(-n_tokens // LANES)
    tile_rows = min(tile_rows, ((rows_needed + 7) // 8) * 8)
    rows = ((rows_needed + tile_rows - 1) // tile_rows) * tile_rows
    ids2d = jnp.pad(input_ids.reshape(-1).astype(jnp.int32),
                    (0, rows * LANES - n_tokens)).reshape(rows, LANES)

    out2d = pl.pallas_call(
        mapping_kernel,
        out_shape=jax.ShapeDtypeStruct((rows, LANES), jnp.int32),
        grid=(rows // tile_rows,),
        in_specs=[
            pl.BlockSpec((tile_rows, LANES), lambda i: (i, 0)),
            pl.BlockSpec((1, table2d.shape[1]), lambda i: (0, 0)),  # resident
        ],
        out_specs=pl.BlockSpec((tile_rows, LANES), lambda i: (i, 0)),
        compiler_params=pltpu.CompilerParams(
            dimension_semantics=("parallel",),
            vmem_limit_bytes=32 * 1024 * 1024,
        ),
    )(ids2d, table2d)

    return out2d.reshape(-1)[:n_tokens].reshape(orig_shape)


if __name__ == "__main__":
    batch, seq, vocab = 2, 8, 128

    # Deterministic "mapping file" contents: mapping[i] = (31*i + 7) % vocab
    mapping_table = ((31 * jnp.arange(vocab, dtype=jnp.int32) + 7) % vocab).astype(
        jnp.int32
    )

    key = jax.random.PRNGKey(0)
    input_ids = jax.random.randint(key, (batch, seq), 0, vocab, dtype=jnp.int32)

    out = jax.block_until_ready(mapping_forward(input_ids, mapping_table))

    # Reference check (plain JAX gather)
    ref = jnp.take(mapping_table, input_ids)
    assert out.shape == (batch, seq) and out.dtype == jnp.int32
    assert bool(jnp.all(out == ref))

    print("KERNEL_OK")
</pallas_src>

<mosaic_0001>
module attributes {stable_mosaic.version = 11 : i64} {
  func.func @mapping_kernel(%arg0: i32, %arg1: memref<8x128xi32, #tpu.memory_space<vmem>>, %arg2: memref<1x128xi32, #tpu.memory_space<vmem>>, %arg3: memref<8x128xi32, #tpu.memory_space<vmem>>) attributes {dimension_semantics = [#tpu.dimension_semantics<parallel>], iteration_bounds = array<i64: 1>, scalar_prefetch = 0 : i64, scratch_operands = 0 : i64, tpu.core_type = #tpu.core_type<tc>, window_params = [{transform_indices = @transform_0, window_bounds = array<i64: 8, 128>}, {pipeline_mode = #tpu.pipeline_mode<synchronous>, transform_indices = @transform_1, window_bounds = array<i64: 1, 128>}, {transform_indices = @transform_2, window_bounds = array<i64: 8, 128>}]} {
    %c0 = arith.constant 0 : index
    %c0_0 = arith.constant 0 : index
    %0 = vector.load %arg1[%c0, %c0_0] : memref<8x128xi32, #tpu.memory_space<vmem>>, vector<8x128xi32>
    %c0_1 = arith.constant 0 : index
    %c0_2 = arith.constant 0 : index
    %1 = vector.load %arg2[%c0_1, %c0_2] : memref<1x128xi32, #tpu.memory_space<vmem>>, vector<1x128xi32>
    %c127_i32 = arith.constant 127 : i32
    %2 = vector.broadcast %c127_i32 : i32 to vector<8x128xi32>
    %3 = arith.andi %0, %2 : vector<8x128xi32>
    %4 = vector.shape_cast %1 : vector<1x128xi32> to vector<1x128xi32>
    %5 = vector.broadcast %4 : vector<1x128xi32> to vector<8x128xi32>
    %6 = vector.shape_cast %3 : vector<8x128xi32> to vector<8x128x1xi32>
    %7 = vector.shape_cast %6 : vector<8x128x1xi32> to vector<8x128xi32>
    %8 = tpu.dynamic_gather %5[%7] in [1] : vector<8x128xi32>, vector<8x128xi32> -> vector<8x128xi32>
    %c0_3 = arith.constant 0 : index
    %c0_4 = arith.constant 0 : index
    %9 = vector.load %arg3[%c0_3, %c0_4] : memref<8x128xi32, #tpu.memory_space<vmem>>, vector<8x128xi32>
    tpu.vector_store %arg3[%c0_3, %c0_4], %8 {strides = array<i32>} : memref<8x128xi32, #tpu.memory_space<vmem>>, vector<8x128xi32>,
    return
  }
  func.func @transform_0(%arg0: i32) -> (i32, i32) {
    %c0_i32 = arith.constant 0 : i32
    %c0_i32_0 = arith.constant 0 : i32
    return %arg0, %c0_i32 : i32, i32
  }
  func.func @transform_1(%arg0: i32) -> (i32, i32) {
    %c0_i32 = arith.constant 0 : i32
    %c0_i32_0 = arith.constant 0 : i32
    %c0_i32_1 = arith.constant 0 : i32
    return %c0_i32, %c0_i32_0 : i32, i32
  }
  func.func @transform_2(%arg0: i32) -> (i32, i32) {
    %c0_i32 = arith.constant 0 : i32
    %c0_i32_0 = arith.constant 0 : i32
    return %arg0, %c0_i32 : i32, i32
  }
}

</mosaic_0001>

<bundles_post_ra>
// kernel: tpu_custom_call.1
= control target key start
LH: loop header
LB: loop body
LE: loop exit
PB: predicated region body
PF: predicated region fallthrough
CT: control target
= control target key end

     0   :  { %7 = vsyncpa [#allocation3], 0  ;;  %s176_s0 = inlined_call_operand.hbm [shape: s32[8,128], index: 0, kind: input, shape index: {}]   ;;  %s177_s1 = inlined_call_operand.hbm [shape: s32[1,128], index: 1, kind: input, shape index: {}]   ;;  %s178_s2 = inlined_call_operand.hbm [shape: s32[8,128], index: 2, kind: output, shape index: {}]  }
   0x1   :  { %8 = vsyncpa [#allocation6], 0 }
   0x2   :  { %9 = vsyncpa [#allocation4], 0  ;;  %s15_s11 = sshll.u32 %s176_s0, 4  ;;  %s149_s12 = smov [#allocation2]   ;;  %s16_s11 = int_to_ptr.hbm [resolvable:$true] %s15_s11 }
   0x3   :  { %s17_s13 = sshll.u32 %s149_s12, 4  ;;  %s26_s16 = sshll.u32 %s177_s1, 4  ;;  %s18_s13 = int_to_ptr.vmem [resolvable:$true] %s17_s13  ;;  %s27_s16 = int_to_ptr.hbm [resolvable:$true] %s26_s16 }
   0x4   :  { %20 = dma.hbm_to_vmem [thread:$0]  %s16_s11, 128, %s18_s13, [#allocation3]  }
   0x5   :  { %s150_s17 = smov [#allocation5]  }
   0x6   :  { %s28_s18 = sshll.u32 %s150_s17, 4  ;;  %s29_s18 = int_to_ptr.vmem [resolvable:$true] %s28_s18 }
   0x7   :  { %31 = dma.hbm_to_vmem [thread:$0]  %s27_s16, 16, %s29_s18, [#allocation6]  }
   0x8   :  { %143 = dma.done.wait [#allocation3], 128  }
   0x9   :  { %144 = vsyncadd [#allocation3], 4294967168 }
   0xa   :  { %145 = dma.done.wait [#allocation6], 16  }
   0xb   :  { %146 = vsyncadd [#allocation6], 4294967280  ;;  %v40_v0 = vld [vmem:[#allocation2] sm:$0xff]  ;;  %v70_v2 = vld [vmem:[#allocation5] ss:$0 sm:$0xff]  ;;  %s151_s0 = smov [#allocation7]  }
   0xc   :  { %v42_v1 = vand.u32 127, %v40_v0  ;;  %s53_s19 = sshll.u32 %s151_s0, 4  ;;  %s55_s1 = sshll.u32 %s178_s2, 4  ;;  %s54_s19 = int_to_ptr.vmem [resolvable:$true] %s53_s19  ;;  %s56_s1 = int_to_ptr.hbm [resolvable:$true] %s55_s1 }
   0xe   :  { %69 = vset.pattern.permute.xlu0 %v42_v1 }
  0x16   :  { %45 = vperm.xlu0 %69, %v70_v2  }
  0x88   :  { %v46_v3 = vpop.permute.xlu0 %45 }
  0x89   :  { %47 = vst [vmem:[#allocation7] sm:$0xff] %v46_v3 }
  0x8a   :  { %58 = dma.vmem_to_hbm [thread:$0]  %s54_s19, 128, %s56_s1, [#allocation4]  }
  0x8b   :  { %147 = dma.done.wait [#allocation4], 128  }
  0x8c   :  { %148 = vsyncadd [#allocation4], 4294967168 }
  0x8d   :  { %63 = vsyncpa [#allocation3], 1 }
  0x8e   :  { %64 = vsyncpa [#allocation6], 1 }
  0x8f   :  { %65 = vsyncpa [#allocation4], 1 }

</bundles_post_ra>
